<compile_context>
chip_gen: v5e
topology: v5e:2x2
jax: 0.10.0
libtpu: 0.0.40
codegen_flags: <defaults>
</compile_context>

<pallas_src>
import jax
import jax.numpy as jnp
from jax.experimental import pallas as pl
from jax.experimental.pallas import tpu as pltpu

LANES = 128
SUBLANES = 8
ROW_TILE = 4096  # 4096 * 128 * 4B = 2 MiB per f32 block


def _mish_kernel(x_ref, o_ref):
    x = x_ref[...].astype(jnp.float32)
    # tanh(softplus(x)) = u / (u + 2) with u = t*(t+2), t = exp(min(x, 20)).
    # Matches torch.nn.functional.softplus threshold=20: for x > 20, y = x.
    t = jnp.exp(jnp.minimum(x, 20.0))
    u = t * (t + 2.0)
    d = u + 2.0
    r = pl.reciprocal(d, approx=True)   # EUP rcp (cheap, same slot as exp)
    r = r * (2.0 - d * r)               # one Newton step on the VALU -> ~f32 exact
    y = jnp.where(x > 20.0, x, x * (u * r))
    o_ref[...] = y.astype(o_ref.dtype)


def mish(x: jax.Array) -> jax.Array:
    """Elementwise mish(x) = x * tanh(softplus(x)); any shape, float dtype."""
    orig_shape = x.shape
    orig_dtype = x.dtype
    n = x.size

    # Minimal padding: only up to a multiple of 8*128 so the flat view reshapes
    # into a lane-dense (rows, 128) slab. No extra full-array copies otherwise.
    pad_unit = SUBLANES * LANES  # 1024
    n_pad = pl.cdiv(n, pad_unit) * pad_unit
    x_flat = jnp.reshape(x, (-1,))
    if n_pad != n:
        x_flat = jnp.pad(x_flat, (0, n_pad - n))

    rows = n_pad // LANES
    x2d = jnp.reshape(x_flat, (rows, LANES))

    # Block: full array if small, else 2 MiB tiles; partial last block via cdiv grid.
    block_rows = rows if rows < ROW_TILE else ROW_TILE
    grid = (pl.cdiv(rows, block_rows),)

    itemsize = jnp.dtype(orig_dtype).itemsize
    cost = pl.CostEstimate(
        flops=10 * n_pad,
        transcendentals=2 * n_pad,            # exp + reciprocal per element
        bytes_accessed=2 * n_pad * itemsize,  # read + write
    )

    out2d = pl.pallas_call(
        _mish_kernel,
        out_shape=jax.ShapeDtypeStruct((rows, LANES), orig_dtype),
        grid_spec=pltpu.PrefetchScalarGridSpec(
            num_scalar_prefetch=0,
            grid=grid,
            in_specs=[pl.BlockSpec((block_rows, LANES), lambda i: (i, 0))],
            out_specs=pl.BlockSpec((block_rows, LANES), lambda i: (i, 0)),
        ),
        compiler_params=pltpu.CompilerParams(
            dimension_semantics=("parallel",),  # shards grid across TCs on v7x
        ),
        cost_estimate=cost,
    )(x2d)

    out_flat = jnp.reshape(out2d, (-1,))
    if n_pad != n:
        out_flat = out_flat[:n]
    return jnp.reshape(out_flat, orig_shape)


def _mish_ref(x):
    xf = x.astype(jnp.float32)
    sp = jnp.where(xf > 20.0, xf, jnp.log1p(jnp.exp(jnp.minimum(xf, 20.0))))
    return (xf * jnp.tanh(sp)).astype(x.dtype)


if __name__ == "__main__":
    key = jax.random.PRNGKey(0)
    # NCHW conv-style tensor: batch=2, channels=4, spatial=16x16
    x = jax.random.normal(key, (2, 4, 16, 16), dtype=jnp.float32) * 5.0

    y = mish(x)
    jax.block_until_ready(y)

    y_ref = _mish_ref(x)
    assert y.shape == x.shape and y.dtype == x.dtype
    assert jnp.allclose(y, y_ref, atol=1e-4, rtol=1e-4)

    print("KERNEL_OK")
</pallas_src>

<mosaic_0001>
module attributes {stable_mosaic.version = 11 : i64} {
  func.func @_mish_kernel(%arg0: i32, %arg1: memref<16x128xf32, #tpu.memory_space<vmem>>, %arg2: memref<16x128xf32, #tpu.memory_space<vmem>>) attributes {dimension_semantics = [#tpu.dimension_semantics<parallel>], iteration_bounds = array<i64: 1>, scalar_prefetch = 0 : i64, scratch_operands = 0 : i64, tpu.core_type = #tpu.core_type<tc>, window_params = [{transform_indices = @transform_0, window_bounds = array<i64: 16, 128>}, {transform_indices = @transform_1, window_bounds = array<i64: 16, 128>}]} {
    %c0 = arith.constant 0 : index
    %c0_0 = arith.constant 0 : index
    %0 = vector.load %arg1[%c0, %c0_0] : memref<16x128xf32, #tpu.memory_space<vmem>>, vector<16x128xf32>
    %cst = arith.constant 2.000000e+01 : f32
    %1 = vector.broadcast %cst : f32 to vector<16x128xf32>
    %2 = arith.minimumf %0, %1 : vector<16x128xf32>
    %3 = math.exp %2 : vector<16x128xf32>
    %cst_1 = arith.constant 2.000000e+00 : f32
    %4 = vector.broadcast %cst_1 : f32 to vector<16x128xf32>
    %5 = arith.addf %3, %4 : vector<16x128xf32>
    %6 = arith.mulf %3, %5 : vector<16x128xf32>
    %cst_2 = arith.constant 2.000000e+00 : f32
    %7 = vector.broadcast %cst_2 : f32 to vector<16x128xf32>
    %8 = arith.addf %6, %7 : vector<16x128xf32>
    %9 = tpu.reciprocal %8 {approx = true} : vector<16x128xf32> -> vector<16x128xf32>
    %10 = arith.mulf %8, %9 : vector<16x128xf32>
    %cst_3 = arith.constant 2.000000e+00 : f32
    %11 = vector.broadcast %cst_3 : f32 to vector<16x128xf32>
    %12 = arith.subf %11, %10 : vector<16x128xf32>
    %13 = arith.mulf %9, %12 : vector<16x128xf32>
    %cst_4 = arith.constant 2.000000e+01 : f32
    %14 = vector.broadcast %cst_4 : f32 to vector<16x128xf32>
    %15 = arith.cmpf ogt, %0, %14 : vector<16x128xf32>
    %16 = arith.mulf %6, %13 : vector<16x128xf32>
    %17 = arith.mulf %0, %16 : vector<16x128xf32>
    %18 = arith.select %15, %0, %17 : vector<16x128xi1>, vector<16x128xf32>
    %c0_5 = arith.constant 0 : index
    %c0_6 = arith.constant 0 : index
    %19 = vector.load %arg2[%c0_5, %c0_6] : memref<16x128xf32, #tpu.memory_space<vmem>>, vector<16x128xf32>
    tpu.vector_store %arg2[%c0_5, %c0_6], %18 {strides = array<i32>} : memref<16x128xf32, #tpu.memory_space<vmem>>, vector<16x128xf32>,
    return
  }
  func.func @transform_0(%arg0: i32) -> (i32, i32) {
    %c0_i32 = arith.constant 0 : i32
    %c0_i32_0 = arith.constant 0 : i32
    return %arg0, %c0_i32 : i32, i32
  }
  func.func @transform_1(%arg0: i32) -> (i32, i32) {
    %c0_i32 = arith.constant 0 : i32
    %c0_i32_0 = arith.constant 0 : i32
    return %arg0, %c0_i32 : i32, i32
  }
}

</mosaic_0001>

<bundles_post_ra>
// kernel: tpu_custom_call.1
= control target key start
LH: loop header
LB: loop body
LE: loop exit
PB: predicated region body
PF: predicated region fallthrough
CT: control target
= control target key end

     0   :  { %6 = vsyncpa [#allocation3], 0  ;;  %s166_s0 = inlined_call_operand.hbm [shape: f32[16,128], index: 0, kind: input, shape index: {}]   ;;  %s167_s1 = inlined_call_operand.hbm [shape: f32[16,128], index: 1, kind: output, shape index: {}]  }
   0x1   :  { %7 = vsyncpa [#allocation4], 0  ;;  %s12_s8 = sshll.u32 %s166_s0, 4  ;;  %s140_s9 = smov [#allocation2]   ;;  %s13_s8 = int_to_ptr.hbm [resolvable:$true] %s12_s8 }
   0x2   :  { %s14_s10 = sshll.u32 %s140_s9, 4  ;;  %s141_s11 = smov 128   ;;  %s15_s10 = int_to_ptr.vmem [resolvable:$true] %s14_s10 }
   0x3   :  { %s142_s12 = smov 8  }
   0x4   :  { %20 = dma.hbm_to_vmem [thread:$0]  %s13_s8, 256, %s15_s10, [#allocation3], %s141_s11, %s141_s11, %s142_s12  }
   0x5   :  { %136 = dma.done.wait [#allocation3], 256  }
   0x6   :  { %137 = vsyncadd [#allocation3], 4294967040  ;;  %v25_v0 = vld [vmem:[#allocation2] sm:$0xff]  ;;  %v26_v1 = vld [vmem:[#allocation2 + $0x8] sm:$0xff]  ;;  %s143_s0 = smov [#allocation5]   ;;  %s63_s16 = sshll.u32 %s167_s1, 4  ;;  %s64_s16 = int_to_ptr.hbm [resolvable:$true] %s63_s16 }
   0x7   :  { %v27_v2 = vmin.f32 %v25_v0, 20.0  ;;  %v28_v3 = vmin.f32 %v26_v1, 20.0  ;;  %vm47_vm0 = vcmp.gt.f32.partialorder %v25_v0, 20.0  ;;  %s61_s13 = sshll.u32 %s143_s0, 4  ;;  %vm48_vm1 = vcmp.gt.f32.partialorder %v26_v1, 20.0  ;;  %s62_s13 = int_to_ptr.vmem [resolvable:$true] %s61_s13 }
   0x9   :  { %v29_v4 = vmul.f32 1.442695, %v27_v2  ;;  %v31_v5 = vmul.f32 1.442695, %v28_v3 }
   0xb   :  { %80 = vpow2.f32 %v29_v4 }
   0xc   :  { %82 = vpow2.f32 %v31_v5 }
  0x11   :  { %v81_v6 = vpop.eup %80 }
  0x12   :  { %v83_v7 = vpop.eup %82  ;;  %v33_v8 = vadd.f32 2.0, %v81_v6 }
  0x13   :  { %v34_v9 = vadd.f32 2.0, %v83_v7 }
  0x14   :  { %v35_v10 = vmul.f32 %v81_v6, %v33_v8 }
  0x15   :  { %v36_v11 = vmul.f32 %v83_v7, %v34_v9 }
  0x16   :  { %v37_v12 = vadd.f32 2.0, %v35_v10 }
  0x17   :  { %v38_v13 = vadd.f32 2.0, %v36_v11 }
  0x18   :  { %84 = vrcp.f32 %v37_v12 }
  0x19   :  { %86 = vrcp.f32 %v38_v13 }
  0x1e   :  { %v85_v14 = vpop.eup %84 }
  0x1f   :  { %v87_v15 = vpop.eup %86  ;;  %v41_v16 = vmul.f32 %v85_v14, %v37_v12 }
  0x20   :  { %v42_v17 = vmul.f32 %v87_v15, %v38_v13 }
  0x21   :  { %v43_v18 = vsub.f32 2.0, %v41_v16 }
  0x22   :  { %v44_v19 = vsub.f32 2.0, %v42_v17 }
  0x23   :  { %v45_v20 = vmul.f32 %v85_v14, %v43_v18 }
  0x24   :  { %v46_v21 = vmul.f32 %v87_v15, %v44_v19 }
  0x25   :  { %v49_v22 = vmul.f32 %v45_v20, %v35_v10 }
  0x26   :  { %v50_v23 = vmul.f32 %v46_v21, %v36_v11 }
  0x27   :  { %v51_v24 = vmul.f32 %v49_v22, %v25_v0 }
  0x28   :  { %v52_v25 = vmul.f32 %v50_v23, %v26_v1 }
  0x29   :  { %v53_v26 = vsel %vm47_vm0, %v25_v0, %v51_v24 }
  0x2a   :  { %55 = vst [vmem:[#allocation5] sm:$0xff] %v53_v26  ;;  %v54_v27 = vsel %vm48_vm1, %v26_v1, %v52_v25 }
  0x2b   :  { %56 = vst [vmem:[#allocation5 + $0x8] sm:$0xff] %v54_v27 }
  0x2c   :  { %69 = dma.vmem_to_hbm [thread:$0]  %s62_s13, 256, %s64_s16, [#allocation4], %s141_s11, %s141_s11, %s142_s12  }
  0x2d   :  { %138 = dma.done.wait [#allocation4], 256  }
  0x2e   :  { %139 = vsyncadd [#allocation4], 4294967040 }
  0x2f   :  { %74 = vsyncpa [#allocation3], 1 }
  0x30   :  { %75 = vsyncpa [#allocation4], 1 }

</bundles_post_ra>
